<compile_context>
chip_gen: v7x
topology: tpu7x:2x2x1
jax: 0.10.0
libtpu: 0.0.40
codegen_flags: <defaults>
</compile_context>

<pallas_src>
import numpy as np
import jax
import jax.numpy as jnp
from jax.experimental import pallas as pl
from jax.experimental.pallas import tpu as pltpu  # noqa: F401  (TPU backend)

COUT, CIN = 2, 87
H_IN = W_IN = 28
STRIDE, PAD = 2, 1
H_OUT = (H_IN + 2 * PAD - 1) // STRIDE + 1      # 15  (PyTorch conv output size)
Z_COLS = H_OUT + 1                              # 16  = [w1 | one v1 row]
P_IN = H_IN * W_IN                              # 784 flattened input pixels
Z_FLAT = H_OUT * Z_COLS                         # 240 flattened z1 slots (row-major)


def _build_constants():
    """Static scatter/placement matrix and bias-count vector (shape-only data)."""
    # place[p, c] maps conv responses at input pixel p into flattened z1 column c.
    #   c = 16*r + cw ; cw == 0  -> w1 slot of row r (gets the interior-sum indicator)
    #                   cw >= 2  -> v1[r, cw-1] interior value, src pixel
    #                               (2r-1, 2(cw-1)-1)  ==  flat 56*r + 2*cw - 31
    #   (row 0 / column 0 of v1 read only zero padding -> bias only, no source pixel)
    place = np.zeros((P_IN, Z_FLAT), dtype=np.float32)
    interior = np.zeros((P_IN,), dtype=np.float32)
    for th in range(1, H_OUT):                  # v1 rows with a real input pixel
        for tw in range(2, Z_COLS):             # z1 cols with a real input pixel
            src = 2 * W_IN * th + 2 * tw - (W_IN + 3)
            place[src, th * Z_COLS + tw] = 1.0
            interior[src] = 1.0
    for r in range(H_OUT):                      # lane-0 columns accumulate w1
        place[:, r * Z_COLS] = interior
    # Bias multiplicity: w1 sees the bias at all 15*15 conv positions, every other
    # z1 slot sees it exactly once.
    counts = np.ones((1, Z_FLAT), dtype=np.float32)
    counts[0, ::Z_COLS] = float(H_OUT * H_OUT)  # 225
    return place, counts


_PLACE_NP, _COUNTS_NP = _build_constants()
# 0/1 values are exact in bf16; halves the constant HBM->VMEM DMA (helps v5e most).
_PLACE = jnp.asarray(_PLACE_NP, dtype=jnp.bfloat16)
_COUNTS = jnp.asarray(_COUNTS_NP)


def fused_conv_sum_cat_kernel(x_ref, w_ref, b_ref, place_ref, counts_ref, z_ref):
    """x_ref: (87,784)  w_ref: (2,87)  b_ref: (2,1)
       place_ref: (784,240) bf16  counts_ref: (1,240)  z_ref: (2,240)=(2,15,16) flat."""
    # 1x1 conv at every input pixel: (2,87)@(87,784) -> (2,784) on the MXU.
    y_full = jnp.dot(w_ref[...], x_ref[...], preferred_element_type=jnp.float32)

    # Scatter interior conv values into the flattened z1 layout AND produce the
    # interior spatial sum in every lane-0 column, all in one exact 0/1 matmul.
    place = place_ref[...].astype(jnp.float32)                       # exact upcast
    z_core = jnp.dot(y_full, place, preferred_element_type=jnp.float32)  # (2, 240)

    # Epilogue: single broadcasted FMA — bias counted 225x in w1 slots, 1x elsewhere.
    z_ref[...] = z_core + b_ref[...] * counts_ref[...]


def run_model(x, weight, bias):
    # x: (1, 87, 28, 28) f32 ; weight: (2, 87, 1, 1) f32 ; bias: (2,) f32
    x2d = x.reshape(CIN, P_IN)         # free contiguous-collapse reshape
    w2d = weight.reshape(COUT, CIN)    # free
    b2d = bias.reshape(COUT, 1)        # free

    # Single gridless custom call; full arrays resident in VMEM (default specs).
    z_flat = pl.pallas_call(
        fused_conv_sum_cat_kernel,
        out_shape=jax.ShapeDtypeStruct((COUT, Z_FLAT), jnp.float32),
    )(x2d, w2d, b2d, _PLACE, _COUNTS)

    # TODO(synk): torch.cat([w1, v2], -1) is ill-formed in PyTorch (1-D vs 3-D
    # tensors would raise); we interpret it as broadcasting w1 to (2,15,1) and
    # concatenating along the last axis.
    return z_flat.reshape(COUT, H_OUT, Z_COLS)   # free reshape


if __name__ == "__main__":
    key = jax.random.PRNGKey(0)
    kx, kw, kb = jax.random.split(key, 3)
    x = jax.random.normal(kx, (1, CIN, H_IN, W_IN), dtype=jnp.float32)
    weight = jax.random.normal(kw, (COUT, CIN, 1, 1), dtype=jnp.float32) * 0.1
    bias = jax.random.normal(kb, (COUT,), dtype=jnp.float32) * 0.1

    z1 = jax.block_until_ready(jax.jit(run_model)(x, weight, bias))

    # Pure-JAX reference for the conv / reduction / concat semantics.
    v1_ref = jax.lax.conv_general_dilated(
        x, weight, window_strides=(STRIDE, STRIDE),
        padding=((PAD, PAD), (PAD, PAD)),
        dimension_numbers=("NCHW", "OIHW", "NCHW"),
    )[0] + bias[:, None, None]                               # (2, 15, 15)
    w1_ref = jnp.sum(v1_ref, axis=(1, 2))                    # (2,)
    z1_ref = jnp.concatenate(
        [jnp.broadcast_to(w1_ref[:, None, None], (COUT, H_OUT, 1)), v1_ref], axis=-1
    )                                                        # (2, 15, 16)

    assert z1.shape == (COUT, H_OUT, H_OUT + 1)
    assert jnp.allclose(z1, z1_ref, atol=1e-3, rtol=1e-4), float(
        jnp.max(jnp.abs(z1 - z1_ref))
    )
    print("KERNEL_OK")
</pallas_src>

<mosaic_0001>
module attributes {stable_mosaic.version = 11 : i64} {
  func.func @fused_conv_sum_cat_kernel(%arg0: memref<87x784xf32, #tpu.memory_space<vmem>>, %arg1: memref<2x87xf32, #tpu.memory_space<vmem>>, %arg2: memref<2x1xf32, #tpu.memory_space<vmem>>, %arg3: memref<784x240xbf16, #tpu.memory_space<vmem>>, %arg4: memref<1x240xf32, #tpu.memory_space<vmem>>, %arg5: memref<2x240xf32, #tpu.memory_space<vmem>>) attributes {dimension_semantics = [], scalar_prefetch = 0 : i64, scratch_operands = 0 : i64, tpu.core_type = #tpu.core_type<tc>} {
    %c0 = arith.constant 0 : index
    %c0_0 = arith.constant 0 : index
    %0 = vector.load %arg1[%c0, %c0_0] : memref<2x87xf32, #tpu.memory_space<vmem>>, vector<2x87xf32>
    %c0_1 = arith.constant 0 : index
    %c0_2 = arith.constant 0 : index
    %1 = vector.load %arg0[%c0_1, %c0_2] : memref<87x784xf32, #tpu.memory_space<vmem>>, vector<87x784xf32>
    %cst = arith.constant dense<0.000000e+00> : vector<2x784xf32>
    %2 = tpu.matmul %0, %1, %cst {dimension_numbers = #tpu.dot_dimension_numbers<[1], [0], [0], [1], [0, 0, 1, 1], [], []>} : vector<2x87xf32>, vector<87x784xf32>, vector<2x784xf32> -> vector<2x784xf32>
    %c0_3 = arith.constant 0 : index
    %c0_4 = arith.constant 0 : index
    %3 = vector.load %arg3[%c0_3, %c0_4] : memref<784x240xbf16, #tpu.memory_space<vmem>>, vector<784x240xbf16>
    %4 = arith.extf %3 : vector<784x240xbf16> to vector<784x240xf32>
    %cst_5 = arith.constant dense<0.000000e+00> : vector<2x240xf32>
    %5 = tpu.matmul %2, %4, %cst_5 {dimension_numbers = #tpu.dot_dimension_numbers<[1], [0], [0], [1], [0, 0, 1, 1], [], []>} : vector<2x784xf32>, vector<784x240xf32>, vector<2x240xf32> -> vector<2x240xf32>
    %c0_6 = arith.constant 0 : index
    %c0_7 = arith.constant 0 : index
    %6 = vector.load %arg2[%c0_6, %c0_7] : memref<2x1xf32, #tpu.memory_space<vmem>>, vector<2x1xf32>
    %c0_8 = arith.constant 0 : index
    %c0_9 = arith.constant 0 : index
    %7 = vector.load %arg4[%c0_8, %c0_9] : memref<1x240xf32, #tpu.memory_space<vmem>>, vector<1x240xf32>
    %8 = vector.broadcast %6 : vector<2x1xf32> to vector<2x240xf32>
    %9 = vector.broadcast %7 : vector<1x240xf32> to vector<2x240xf32>
    %10 = arith.mulf %8, %9 : vector<2x240xf32>
    %11 = arith.addf %5, %10 : vector<2x240xf32>
    %c0_10 = arith.constant 0 : index
    %c0_11 = arith.constant 0 : index
    %12 = vector.load %arg5[%c0_10, %c0_11] : memref<2x240xf32, #tpu.memory_space<vmem>>, vector<2x240xf32>
    tpu.vector_store %arg5[%c0_10, %c0_11], %11 {strides = array<i32>} : memref<2x240xf32, #tpu.memory_space<vmem>>, vector<2x240xf32>,
    return
  }
}

</mosaic_0001>

<bundles_post_ra>
// kernel: run_model.1
= control target key start
LH: loop header
LB: loop body
LE: loop exit
PB: predicated region body
PF: predicated region fallthrough
CT: control target
= control target key end

     0   :  { %v1607_v3 = vmov 0.0   ;;  %vm102_vm0 = vcmask 1046528   ;;  %vm98_vm1 = vcmask 711680   ;;  %vm1609_vm2 = vmmov 0   ;;  %s2205_s0 = inlined_call_operand.vmem [shape: f32[87,784], index: 0, kind: input, shape index: {}]   ;;  %s2206_s1 = inlined_call_operand.vmem [shape: f32[2,87], index: 1, kind: input, shape index: {}]   ;;  %s2207_s3 = inlined_call_operand.vmem [shape: bf16[784,240], index: 3, kind: input, shape index: {}]   ;;  %s2208_s2 = inlined_call_operand.vmem [shape: f32[2,1], index: 2, kind: input, shape index: {}]   ;;  %s2209_s4 = inlined_call_operand.vmem [shape: f32[1,240], index: 4, kind: input, shape index: {}]   ;;  %s2210_s5 = inlined_call_operand.vmem [shape: f32[2,240], index: 5, kind: output, shape index: {}]  }
   0x1   :  { %v22_v0 = vld [vmem:[%s2205_s0 + $0x8] sm:$0xff]  ;;  %v29_v1 = vld [vmem:[%s2205_s0 + $0x40] sm:$0xff]  ;;  %188 = vmatprep.mubr.f32.mxu1 %v1607_v3  ;;  %330 = vmatprep.mubr.f32.mxu0 %v1607_v3  ;;  %v28_v5 = vld [vmem:[%s2205_s0 + $0x38] sm:$0xff]  ;;  %vm721_vm3 = vcmask 130048   ;;  %vm1020_vm4 = vcmask 1041408   ;;  %vm1021_vm5 = vcmask 912386  }
   0x2   :  { %v21_v2 = vld [vmem:[%s2205_s0] sm:$0xff]  ;;  %v1077_v4 = vpack.c.bf16 %v29_v1, %v22_v0  ;;  %v36_v6 = vld [vmem:[%s2205_s0 + $0x78] sm:$0xff]  ;;  %v43_v7 = vld [vmem:[%s2205_s0 + $0xb0] sm:$0xff] }
   0x3   :  { %v1079_v8 = vpack.c.bf16 %v28_v5, %v21_v2  ;;  %v1081_v9 = vpack.c.bf16 %v43_v7, %v36_v6  ;;  %v35_v10 = vld [vmem:[%s2205_s0 + $0x70] sm:$0xff]  ;;  %v42_v11 = vld [vmem:[%s2205_s0 + $0xa8] sm:$0xff]  ;;  %v57_v13 = vld [vmem:[%s2205_s0 + $0x120] sm:$0xff] }
   0x4   :  { %v50_v12 = vld [vmem:[%s2205_s0 + $0xe8] sm:$0xff]  ;;  %1078 = vmatprep.subr.bf16.mxu1 %v1077_v4  ;;  %v1083_v14 = vpack.c.bf16 %v42_v11, %v35_v10  ;;  %v49_v16 = vld [vmem:[%s2205_s0 + $0xe0] sm:$0xff]  ;;  %v56_v17 = vld [vmem:[%s2205_s0 + $0x118] sm:$0xff] }
   0x5   :  { %1080 = vmatpush1.bf16.msra.mxu1 %v1079_v8  ;;  %v1085_v15 = vpack.c.bf16 %v57_v13, %v50_v12  ;;  %v64_v18 = vld [vmem:[%s2205_s0 + $0x158] sm:$0xff]  ;;  %v71_v19 = vld [vmem:[%s2205_s0 + $0x190] sm:$0xff]  ;;  %v1087_v20 = vpack.c.bf16 %v56_v17, %v49_v16  ;;  %v70_v23 = vld [vmem:[%s2205_s0 + $0x188] sm:$0xff] }
   0x6   :  { %1082 = vmatprep.subr.bf16.mxu1 %v1081_v9  ;;  %v1089_v21 = vpack.c.bf16 %v71_v19, %v64_v18  ;;  %v63_v22 = vld [vmem:[%s2205_s0 + $0x150] sm:$0xff]  ;;  %v78_v24 = vld [vmem:[%s2205_s0 + $0x1c8] sm:$0xff]  ;;  %v85_v25 = vld [vmem:[%s2205_s0 + $0x200] sm:$0xff] }
   0x7   :  { %v1091_v26 = vpack.c.bf16 %v70_v23, %v63_v22  ;;  %v1093_v27 = vpack.c.bf16 %v85_v25, %v78_v24  ;;  %v77_v28 = vld [vmem:[%s2205_s0 + $0x1c0] sm:$0xff]  ;;  %v84_v29 = vld [vmem:[%s2205_s0 + $0x1f8] sm:$0xff]  ;;  %v26_v30 = vld [vmem:[%s2205_s0 + $0x28] sm:$0xff] }
   0x8   :  { %v33_v31 = vld [vmem:[%s2205_s0 + $0x60] sm:$0xff]  ;;  %v1095_v33 = vpack.c.bf16 %v84_v29, %v77_v28  ;;  %v92_v34 = vld [vmem:[%s2205_s0 + $0x238] sm:$0x7f]  ;;  %v47_v38 = vld [vmem:[%s2205_s0 + $0xd0] sm:$0xff] }
   0x9   :  { %1084 = vmatpush1.bf16.msra.mxu1 %v1083_v14  ;;  %v25_v32 = vld [vmem:[%s2205_s0 + $0x20] sm:$0xff]  ;;  %v1117_v35 = vpack.c.bf16 %v33_v31, %v26_v30  ;;  %v32_v36 = vld [vmem:[%s2205_s0 + $0x58] sm:$0xff]  ;;  %v39_v42 = vld [vmem:[%s2205_s0 + $0x90] sm:$0xff] }
   0xa   :  { %1086 = vmatprep.subr.bf16.mxu1 %v1085_v15  ;;  %v40_v37 = vld [vmem:[%s2205_s0 + $0x98] sm:$0xff]  ;;  %v1119_v40 = vpack.c.bf16 %v32_v36, %v25_v32  ;;  %v46_v43 = vld [vmem:[%s2205_s0 + $0xc8] sm:$0xff]  ;;  %v31_v44 = vld [vmem:[%s2205_s0 + $0x50] sm:$0xff] }
   0xb   :  { %v24_v39 = vld [vmem:[%s2205_s0 + $0x18] sm:$0xff]  ;;  %v1121_v41 = vpack.c.bf16 %v47_v38, %v40_v37  ;;  %1118 = vmatprep.subr.bf16.mxu0 %v1117_v35  ;;  %v54_v45 = vld [vmem:[%s2205_s0 + $0x108] sm:$0xff]  ;;  %v61_v46 = vld [vmem:[%s2205_s0 + $0x140] sm:$0xff]  ;;  %v1123_v50 = vpack.c.bf16 %v46_v43, %v39_v42 }
   0xc   :  { %v23_v47 = vld [vmem:[%s2205_s0 + $0x10] sm:$0xff]  ;;  %v30_v48 = vld [vmem:[%s2205_s0 + $0x48] sm:$0xff]  ;;  %1120 = vmatpush1.bf16.msra.mxu0 %v1119_v40  ;;  %v45_v51 = vld [vmem:[%s2205_s0 + $0xc0] sm:$0xff]  ;;  %v1125_v52 = vpack.c.bf16 %v61_v46, %v54_v45  ;;  %v1097_v56 = vpack.c.bf16 %v31_v44, %v24_v39 }
   0xd   :  { %1088 = vmatpush1.bf16.msra.mxu1 %v1087_v20  ;;  %v38_v49 = vld [vmem:[%s2205_s0 + $0x88] sm:$0xff]  ;;  %1122 = vmatprep.subr.bf16.mxu0 %v1121_v41  ;;  %v53_v53 = vld [vmem:[%s2205_s0 + $0x100] sm:$0xff]  ;;  %v60_v54 = vld [vmem:[%s2205_s0 + $0x138] sm:$0xff]  ;;  %v1099_v60 = vpack.c.bf16 %v30_v48, %v23_v47  ;;  %v1608_v47 = vmov 0.0|0.0  }
   0xe   :  { %1090 = vmatprep.subr.bf16.mxu1 %v1089_v21  ;;  %v91_v55 = vld [vmem:[%s2205_s0 + $0x230] sm:$0x7f]  ;;  %v68_v57 = vld [vmem:[%s2205_s0 + $0x178] sm:$0xff]  ;;  %v1774_v59 = vld [vmem:[%s2206_s1] sm:$0x3]  ;;  %v1101_v61 = vpack.c.bf16 %v45_v51, %v38_v49  ;;  %v1127_v1 = vpack.c.bf16 %v60_v54, %v53_v53 }
   0xf   :  { %v75_v58 = vld [vmem:[%s2205_s0 + $0x1b0] sm:$0xff]  ;;  %v37_v62 = vld [vmem:[%s2205_s0 + $0x80] sm:$0xff]  ;;  %v44_v63 = vld [vmem:[%s2205_s0 + $0xb8] sm:$0xff] }
  0x10   :  { %v52_v0 = vld [vmem:[%s2205_s0 + $0xf8] sm:$0xff]  ;;  %1124 = vmatpush1.bf16.msra.mxu0 %v1123_v50  ;;  %v59_v2 = vld [vmem:[%s2205_s0 + $0x130] sm:$0xff]  ;;  %v1129_v4 = vpack.c.bf16 %v75_v58, %v68_v57  ;;  %v74_v6 = vld [vmem:[%s2205_s0 + $0x1a8] sm:$0xff]  ;;  %v1103_v11 = vpack.c.bf16 %v44_v63, %v37_v62 }
  0x11   :  { %1092 = vmatpush1.bf16.msra.mxu1 %v1091_v26  ;;  %1126 = vmatprep.subr.bf16.mxu0 %v1125_v52  ;;  %v67_v5 = vld [vmem:[%s2205_s0 + $0x170] sm:$0xff]  ;;  %v58_v8 = vld [vmem:[%s2205_s0 + $0x128] sm:$0xff]  ;;  %v89_v10 = vld [vmem:[%s2205_s0 + $0x220] sm:$0xff]  ;;  %v1105_v13 = vpack.c.bf16 %v59_v2, %v52_v0 }
  0x12   :  { %1094 = vmatprep.subr.bf16.mxu1 %v1093_v27  ;;  %v51_v7 = vld [vmem:[%s2205_s0 + $0xf0] sm:$0xff]  ;;  %v82_v9 = vld [vmem:[%s2205_s0 + $0x1e8] sm:$0xff]  ;;  %v73_v14 = vld [vmem:[%s2205_s0 + $0x1a0] sm:$0xff]  ;;  %v1131_v15 = vpack.c.bf16 %v74_v6, %v67_v5 }
  0x13   :  { %v66_v12 = vld [vmem:[%s2205_s0 + $0x168] sm:$0xff]  ;;  %v1133_v16 = vpack.c.bf16 %v89_v10, %v82_v9  ;;  %v81_v17 = vld [vmem:[%s2205_s0 + $0x1e0] sm:$0xff]  ;;  %v88_v18 = vld [vmem:[%s2205_s0 + $0x218] sm:$0xff]  ;;  %v1107_v19 = vpack.c.bf16 %v58_v8, %v51_v7 }
  0x14   :  { %1128 = vmatpush1.bf16.msra.mxu0 %v1127_v1  ;;  %v65_v20 = vld [vmem:[%s2205_s0 + $0x160] sm:$0xff]  ;;  %v1109_v21 = vpack.c.bf16 %v73_v14, %v66_v12  ;;  %v72_v22 = vld [vmem:[%s2205_s0 + $0x198] sm:$0xff]  ;;  %v1135_v23 = vpack.c.bf16 %v88_v18, %v81_v17  ;;  %v87_v25 = vld [vmem:[%s2205_s0 + $0x210] sm:$0xff] }
  0x15   :  { %1096 = vmatpush1.bf16.msra.mxu1 %v1095_v33  ;;  %1130 = vmatprep.subr.bf16.mxu0 %v1129_v4  ;;  %v80_v24 = vld [vmem:[%s2205_s0 + $0x1d8] sm:$0xff]  ;;  %v1111_v27 = vpack.c.bf16 %v72_v22, %v65_v20  ;;  %v79_v28 = vld [vmem:[%s2205_s0 + $0x1d0] sm:$0xff]  ;;  %v86_v30 = vld [vmem:[%s2205_s0 + $0x208] sm:$0xff] }
  0x16   :  { %1028 = vmatprep.subr.msk.mxu1 %vm102_vm0, %v92_v34  ;;  %v96_v26 = vld [vmem:[%s2205_s0 + $0x258] sm:$0x7f]  ;;  %v1113_v29 = vpack.c.bf16 %v87_v25, %v80_v24  ;;  %v95_v31 = vld [vmem:[%s2205_s0 + $0x250] sm:$0x7f]  ;;  %v1478_v32 = vld [vmem:[%s2207_s3 + $0x104] ss:$8 sps:$4 sm:$0xff]   ;;  %v1115_v34 = vpack.c.bf16 %v86_v30, %v79_v28 }
  0x17   :  { %v1480_v33 = vld [vmem:[%s2207_s3 + $0x100] ss:$8 sps:$4 sm:$0xff]   ;;  %v1484_v35 = vld [vmem:[%s2207_s3 + $0x114] ss:$8 sps:$4 sm:$0xff]   ;;  %v1486_v39 = vld [vmem:[%s2207_s3 + $0x110] ss:$8 sps:$4 sm:$0xff]  }
  0x18   :  { %1132 = vmatpush1.bf16.msra.mxu0 %v1131_v15  ;;  %v94_v36 = vld [vmem:[%s2205_s0 + $0x248] sm:$0x7f]  ;;  %v27_v37 = vld [vmem:[%s2205_s0 + $0x30] sm:$0xff]  ;;  %v93_v41 = vld [vmem:[%s2205_s0 + $0x240] sm:$0x7f] }
  0x19   :  { %1029 = vmatpush1.msk.msra.mxu1 %vm102_vm0, %v91_v55  ;;  %1134 = vmatprep.subr.bf16.mxu0 %v1133_v16  ;;  %v34_v38 = vld [vmem:[%s2205_s0 + $0x68] sm:$0xff]  ;;  %v41_v43 = vld [vmem:[%s2205_s0 + $0xa0] sm:$0xff]  ;;  %v48_v44 = vld [vmem:[%s2205_s0 + $0xd8] sm:$0xff] }
  0x1a   :  { %1030 = vmatmul.mubr.msk.f32.vlgmr.msra.gmra.mrb[0].mxu1 %vm98_vm1, %v1774_v59  ;;  %1098 = vmatprep.subr.bf16.mxu1 %v1097_v56  ;;  %v1490_v40 = vld [vmem:[%s2207_s3 + $0x124] ss:$8 sps:$4 sm:$0xff]   ;;  %v1138_v42 = vpack.c.bf16 %v34_v38, %v27_v37  ;;  %v1492_v45 = vld [vmem:[%s2207_s3 + $0x120] ss:$8 sps:$4 sm:$0xff]   ;;  %v1496_v46 = vld [vmem:[%s2207_s3 + $0x134] ss:$8 sps:$4 sm:$0xff]   ;;  %v1141_v48 = vpack.c.bf16 %v48_v44, %v41_v43 }
  0x1b   :  { %1100 = vmatpush1.bf16.msra.mxu1 %v1099_v60  ;;  %259 = vmatprep.mubr.f32.mxu1 %v1607_v3  ;;  %v55_v49 = vld [vmem:[%s2205_s0 + $0x110] sm:$0xff]  ;;  %v62_v50 = vld [vmem:[%s2205_s0 + $0x148] sm:$0xff]  ;;  %v69_v54 = vld [vmem:[%s2205_s0 + $0x180] sm:$0xff] }
  0x1c   :  { %1102 = vmatprep.subr.bf16.mxu1 %v1101_v61  ;;  %1136 = vmatpush1.bf16.msra.mxu0 %v1135_v23  ;;  %v1498_v51 = vld [vmem:[%s2207_s3 + $0x130] ss:$8 sps:$4 sm:$0xff]   ;;  %v1502_v52 = vld [vmem:[%s2207_s3 + $0x144] ss:$8 sps:$4 sm:$0xff]   ;;  %v1144_v53 = vpack.c.bf16 %v62_v50, %v55_v49  ;;  %v1504_v56 = vld [vmem:[%s2207_s3 + $0x140] ss:$8 sps:$4 sm:$0xff]  }
  0x1d   :  { %1034 = vmatprep.subr.msk.mxu0 %vm102_vm0, %v96_v26  ;;  %v76_v55 = vld [vmem:[%s2205_s0 + $0x1b8] sm:$0xff]  ;;  %v83_v60 = vld [vmem:[%s2205_s0 + $0x1f0] sm:$0xff]  ;;  %v90_v61 = vld [vmem:[%s2205_s0 + $0x228] sm:$0xff] }
  0x1e   :  { %v1508_v57 = vld [vmem:[%s2207_s3 + $0x154] ss:$8 sps:$4 sm:$0xff]   ;;  %v1147_v58 = vpack.c.bf16 %v76_v55, %v69_v54  ;;  %v1510_v62 = vld [vmem:[%s2207_s3 + $0x150] ss:$8 sps:$4 sm:$0xff]   ;;  %v1514_v63 = vld [vmem:[%s2207_s3 + $0x164] ss:$8 sps:$4 sm:$0xff]   ;;  %v1150_v0 = vpack.c.bf16 %v90_v61, %v83_v60 }
  0x1f   :  { %1104 = vmatpush1.bf16.msra.mxu1 %v1103_v11  ;;  %v1516_v1 = vld [vmem:[%s2207_s3 + $0x160] ss:$8 sps:$4 sm:$0xff]   ;;  %v1520_v2 = vld [vmem:[%s2207_s3 + $0x174] ss:$8 sps:$4 sm:$0xff]   ;;  %v1460_v5 = vld [vmem:[%s2207_s3 + $0x4] ss:$8 sps:$4 sm:$0xff]  }
  0x20   :  { %1106 = vmatprep.subr.bf16.mxu1 %v1105_v13  ;;  %1035 = vmatpush1.msk.msra.mxu0 %vm102_vm0, %v95_v31  ;;  %v97_v4 = vld [vmem:[%s2205_s0 + $0x260] sm:$0x7f]  ;;  %v1522_v7 = vld [vmem:[%s2207_s3 + $0x170] ss:$8 sps:$4 sm:$0xff]   ;;  %v1463_v8 = vld [vmem:[%s2207_s3 + $0x14] ss:$8 sps:$4 sm:$0xff]  }
  0x21   :  { %1036 = vmatmul.mubr.msk.f32.vlgmr.msra.gmra.mrb[0].mxu0 %vm98_vm1, %v1774_v59  ;;  %1217 = vmatprep.subr.bf16.mxu0 %v1478_v32  ;;  %v1462_v6 = vld [vmem:[%s2207_s3] ss:$8 sps:$4 sm:$0xff]   ;;  %v1526_v9 = vld [vmem:[%s2207_s3 + $0x184] ss:$8 sps:$4 sm:$0xff]   ;;  %v1465_v10 = vld [vmem:[%s2207_s3 + $0x10] ss:$8 sps:$4 sm:$0xff]  }
  0x22   :  { %1219 = vmatpush1.bf16.msra.mxu0 %v1480_v33  ;;  %v1528_v11 = vld [vmem:[%s2207_s3 + $0x180] ss:$8 sps:$4 sm:$0xff]   ;;  %v1466_v12 = vld [vmem:[%s2207_s3 + $0x24] ss:$8 sps:$4 sm:$0xff]   ;;  %v1532_v13 = vld [vmem:[%s2207_s3 + $0x194] ss:$8 sps:$4 sm:$0xff]  }
  0x23   :  { %1108 = vmatpush1.bf16.msra.mxu1 %v1107_v19  ;;  %1221 = vmatprep.subr.bf16.mxu0 %v1484_v35  ;;  %v1468_v14 = vld [vmem:[%s2207_s3 + $0x20] ss:$8 sps:$4 sm:$0xff]   ;;  %v1469_v15 = vld [vmem:[%s2207_s3 + $0x34] ss:$8 sps:$4 sm:$0xff]   ;;  %v1471_v16 = vld [vmem:[%s2207_s3 + $0x30] ss:$8 sps:$4 sm:$0xff]  }
  0x24   :  { %1110 = vmatprep.subr.bf16.mxu1 %v1109_v21  ;;  %v1472_v17 = vld [vmem:[%s2207_s3 + $0x44] ss:$8 sps:$4 sm:$0xff]   ;;  %v1474_v18 = vld [vmem:[%s2207_s3 + $0x40] ss:$8 sps:$4 sm:$0xff]   ;;  %v1475_v19 = vld [vmem:[%s2207_s3 + $0x54] ss:$8 sps:$4 sm:$0xff]  }
  0x25   :  { %v1477_v20 = vld [vmem:[%s2207_s3 + $0x50] ss:$8 sps:$4 sm:$0xff]   ;;  %v1481_v21 = vld [vmem:[%s2207_s3 + $0x64] ss:$8 sps:$4 sm:$0xff]   ;;  %v1483_v22 = vld [vmem:[%s2207_s3 + $0x60] ss:$8 sps:$4 sm:$0xff]  }
  0x26   :  { %1223 = vmatpush1.bf16.msra.mxu0 %v1486_v39  ;;  %v1487_v23 = vld [vmem:[%s2207_s3 + $0x74] ss:$8 sps:$4 sm:$0xff]   ;;  %v1489_v24 = vld [vmem:[%s2207_s3 + $0x70] ss:$8 sps:$4 sm:$0xff]   ;;  %v1493_v25 = vld [vmem:[%s2207_s3 + $0x84] ss:$8 sps:$4 sm:$0xff]  }
  0x27   :  { %1112 = vmatpush1.bf16.msra.mxu1 %v1111_v27  ;;  %1225 = vmatprep.subr.bf16.mxu0 %v1490_v40  ;;  %v1495_v26 = vld [vmem:[%s2207_s3 + $0x80] ss:$8 sps:$4 sm:$0xff]   ;;  %v1499_v27 = vld [vmem:[%s2207_s3 + $0x94] ss:$8 sps:$4 sm:$0xff]   ;;  %v1501_v28 = vld [vmem:[%s2207_s3 + $0x90] ss:$8 sps:$4 sm:$0xff]  }
  0x28   :  { %1114 = vmatprep.subr.bf16.mxu1 %v1113_v29  ;;  %v1505_v29 = vld [vmem:[%s2207_s3 + $0xa4] ss:$8 sps:$4 sm:$0xff]   ;;  %v1507_v30 = vld [vmem:[%s2207_s3 + $0xa0] ss:$8 sps:$4 sm:$0xff]   ;;  %v1511_v32 = vld [vmem:[%s2207_s3 + $0xb4] ss:$8 sps:$4 sm:$0xff]  }
  0x29   :  { %v1538_v31 = vld [vmem:[%s2207_s3 + $0x1a4] ss:$8 sps:$4 sm:$0xff]   ;;  %v1540_v33 = vld [vmem:[%s2207_s3 + $0x1a0] ss:$8 sps:$4 sm:$0xff]   ;;  %v1541_v35 = vld [vmem:[%s2207_s3 + $0x1b4] ss:$8 sps:$4 sm:$0xff]  }
  0x2a   :  { %1227 = vmatpush1.bf16.msra.mxu0 %v1492_v45  ;;  %v1543_v37 = vld [vmem:[%s2207_s3 + $0x1b0] ss:$8 sps:$4 sm:$0xff]   ;;  %v1544_v38 = vld [vmem:[%s2207_s3 + $0x1c4] ss:$8 sps:$4 sm:$0xff]   ;;  %v1546_v39 = vld [vmem:[%s2207_s3 + $0x1c0] ss:$8 sps:$4 sm:$0xff]  }
  0x2b   :  { %1116 = vmatpush1.bf16.msra.mxu1 %v1115_v34  ;;  %1229 = vmatprep.subr.bf16.mxu0 %v1496_v46  ;;  %v1513_v34 = vld [vmem:[%s2207_s3 + $0xb0] ss:$8 sps:$4 sm:$0xff]   ;;  %v1519_v40 = vld [vmem:[%s2207_s3 + $0xc0] ss:$8 sps:$4 sm:$0xff]   ;;  %v1550_v45 = vld [vmem:[%s2207_s3 + $0x1e4] ss:$8 sps:$4 sm:$0xff]  }
  0x2c   :  { %1031 = vmatprep.subr.msk.mxu1 %vm102_vm0, %v94_v36  ;;  %v1517_v36 = vld [vmem:[%s2207_s3 + $0xc4] ss:$8 sps:$4 sm:$0xff]   ;;  %v1549_v43 = vld [vmem:[%s2207_s3 + $0x1d0] ss:$8 sps:$4 sm:$0xff]   ;;  %v1553_v49 = vld [vmem:[%s2207_s3 + $0x1f4] ss:$8 sps:$4 sm:$0xff]  }
  0x2d   :  { %v1525_v44 = vld [vmem:[%s2207_s3 + $0xd0] ss:$8 sps:$4 sm:$0xff]   ;;  %v1529_v46 = vld [vmem:[%s2207_s3 + $0xe4] ss:$8 sps:$4 sm:$0xff]   ;;  %v1535_v50 = vld [vmem:[%s2207_s3 + $0xf4] ss:$8 sps:$4 sm:$0xff]  }
  0x2e   :  { %1231 = vmatpush1.bf16.msra.mxu0 %v1498_v51  ;;  %v1555_v51 = vld [vmem:[%s2207_s3 + $0x1f0] ss:$8 sps:$4 sm:$0xff]   ;;  %v1610_v54 = vmov 0   ;;  %v701_v55 = vld [vmem:[%s2208_s2] sm:$0x3]  ;;  %vm1022_vm6 = vmor %vm1021_vm5, %vm1020_vm4 }
  0x2f   :  { %1032 = vmatpush1.msk.msra.mxu1 %vm102_vm0, %v93_v41  ;;  %1233 = vmatprep.subr.bf16.mxu0 %v1502_v52  ;;  %v1547_v41 = vld [vmem:[%s2207_s3 + $0x1d4] ss:$8 sps:$4 sm:$0xff]   ;;  %v1537_v52 = vld [vmem:[%s2207_s3 + $0xf0] ss:$8 sps:$4 sm:$0xff]  }
  0x30   :  { %1033 = vmatmul.mubr.msk.f32.vlgmr.msra.gmra.mrb[2].mxu1 %vm98_vm1, %v1774_v59  ;;  %1137 = vmatprep.subr.bf16.mxu1 %v1608_v47 }
  0x31   :  { %1139 = vmatpush3.bf16.msra.mxu1 %v1138_v42  ;;  %1074 = vmatprep.mubr.msk.f32.mxu1 %vm1609_vm2, %v1607_v3  ;;  %v1523_v42 = vld [vmem:[%s2207_s3 + $0xd4] ss:$8 sps:$4 sm:$0xff]  }
  0x32   :  { %1140 = vmatprep.subr.bf16.mxu1 %v1608_v47  ;;  %1235 = vmatpush1.bf16.msra.mxu0 %v1504_v56  ;;  %v1604_v56 = vld [vmem:[%s2207_s3 + $0x304] ss:$8 sps:$4 sm:$0xff]  }
  0x33   :  { %1237 = vmatprep.subr.bf16.mxu0 %v1508_v57  ;;  %1459 = vset.pattern.permute.xlu0 %v1610_v54 }
  0x34   :  { %705 = vperm.xlu0 %1459, %v701_v55  }
  0x35   :  { %1142 = vmatpush3.bf16.msra.mxu1 %v1141_v48  ;;  %v1531_v48 = vld [vmem:[%s2207_s3 + $0xe0] ss:$8 sps:$4 sm:$0xff]  }
  0x36   :  { %1143 = vmatprep.subr.bf16.mxu1 %v1608_v47  ;;  %1239 = vmatpush1.bf16.msra.mxu0 %v1510_v62 }
  0x37   :  { %1241 = vmatprep.subr.bf16.mxu0 %v1514_v63 }
  0x39   :  { %1145 = vmatpush3.bf16.msra.mxu1 %v1144_v53  ;;  %v1556_v53 = vld [vmem:[%s2207_s3 + $0x204] ss:$8 sps:$4 sm:$0xff]  }
  0x3a   :  { %1146 = vmatprep.subr.bf16.mxu1 %v1608_v47  ;;  %1243 = vmatpush1.bf16.msra.mxu0 %v1516_v1 }
  0x3b   :  { %1245 = vmatprep.subr.bf16.mxu0 %v1520_v2  ;;  %v1559_v2 = vld [vmem:[%s2207_s3 + $0x214] ss:$8 sps:$4 sm:$0xff]  }
  0x3d   :  { %1148 = vmatpush3.bf16.msra.mxu1 %v1147_v58  ;;  %v1606_v58 = vld [vmem:[%s2207_s3 + $0x300] ss:$8 sps:$4 sm:$0xff]  }
  0x3e   :  { %1149 = vmatprep.subr.bf16.mxu1 %v1608_v47  ;;  %1247 = vmatpush1.bf16.msra.mxu0 %v1522_v7  ;;  %v1552_v47 = vld [vmem:[%s2207_s3 + $0x1e0] ss:$8 sps:$4 sm:$0xff]   ;;  %v1567_v7 = vld [vmem:[%s2207_s3 + $0x230] ss:$8 sps:$4 sm:$0xff]  }
  0x3f   :  { %1249 = vmatprep.subr.bf16.mxu0 %v1526_v9  ;;  %v1570_v9 = vld [vmem:[%s2207_s3 + $0x240] ss:$8 sps:$4 sm:$0xff]  }
  0x41   :  { %1151 = vmatpush3.bf16.msra.mxu1 %v1150_v0  ;;  %v1558_v0 = vld [vmem:[%s2207_s3 + $0x200] ss:$8 sps:$4 sm:$0xff]  }
  0x42   :  { %1072 = vmatprep.subr.mxu1 %v1607_v3  ;;  %1251 = vmatpush1.bf16.msra.mxu0 %v1528_v11  ;;  %v1573_v11 = vld [vmem:[%s2207_s3 + $0x250] ss:$8 sps:$4 sm:$0xff]  }
  0x43   :  { %1253 = vmatprep.subr.bf16.mxu0 %v1532_v13 }
  0x45   :  { %1073 = vmatpush3.msk.msra.mxu1 %vm102_vm0, %v97_v4  ;;  %v1562_v4 = vld [vmem:[%s2207_s3 + $0x224] ss:$8 sps:$4 sm:$0xff]  }
  0x46   :  { %1075 = vmatmul.mubr.msk.f32.vlgmr.msra.gmra.mrb[4].mxu1 %vm98_vm1, %v1774_v59  ;;  %1153 = vmatprep.subr.bf16.mxu1 %v1460_v5  ;;  %v1534_v59 = vld [vmem:[%s2207_s3 + $0x190] ss:$8 sps:$4 sm:$0xff]   ;;  %v1564_v5 = vld [vmem:[%s2207_s3 + $0x220] ss:$8 sps:$4 sm:$0xff]  }
  0x47   :  { %1155 = vmatpush1.bf16.msra.mxu1 %v1462_v6  ;;  %1255 = vmatpush1.bf16.msra.mxu0 %v1534_v59  ;;  %v1565_v6 = vld [vmem:[%s2207_s3 + $0x234] ss:$8 sps:$4 sm:$0xff]   ;;  %v1576_v59 = vld [vmem:[%s2207_s3 + $0x260] ss:$8 sps:$4 sm:$0xff]  }
  0x48   :  { %1157 = vmatprep.subr.bf16.mxu1 %v1463_v8  ;;  %1257 = vmatprep.subr.bf16.mxu0 %v1538_v31  ;;  %v1568_v8 = vld [vmem:[%s2207_s3 + $0x244] ss:$8 sps:$4 sm:$0xff]   ;;  %v1601_v31 = vld [vmem:[%s2207_s3 + $0x2f4] ss:$8 sps:$4 sm:$0xff]  }
  0x4b   :  { %1159 = vmatpush1.bf16.msra.mxu1 %v1465_v10  ;;  %1259 = vmatpush1.bf16.msra.mxu0 %v1540_v33  ;;  %v1571_v10 = vld [vmem:[%s2207_s3 + $0x254] ss:$8 sps:$4 sm:$0xff]  }
  0x4c   :  { %1161 = vmatprep.subr.bf16.mxu1 %v1466_v12  ;;  %1261 = vmatprep.subr.bf16.mxu0 %v1541_v35  ;;  %v1574_v12 = vld [vmem:[%s2207_s3 + $0x264] ss:$8 sps:$4 sm:$0xff]  }
  0x4f   :  { %1163 = vmatpush1.bf16.msra.mxu1 %v1468_v14  ;;  %1263 = vmatpush1.bf16.msra.mxu0 %v1543_v37  ;;  %v709_v37 = vlaneseq }
  0x50   :  { %1165 = vmatprep.subr.bf16.mxu1 %v1469_v15  ;;  %1265 = vmatprep.subr.bf16.mxu0 %v1544_v38  ;;  %v1577_v15 = vld [vmem:[%s2207_s3 + $0x274] ss:$8 sps:$4 sm:$0xff]  }
  0x51   :  { %v710_v38 = vshrl.u32 %v709_v37, 7 }
  0x53   :  { %1167 = vmatpush1.bf16.msra.mxu1 %v1471_v16  ;;  %1267 = vmatpush1.bf16.msra.mxu0 %v1546_v39  ;;  %v1579_v16 = vld [vmem:[%s2207_s3 + $0x270] ss:$8 sps:$4 sm:$0xff]   ;;  %v711_v39 = vsub.s32 0, %v710_v38 }
  0x54   :  { %1169 = vmatprep.subr.bf16.mxu1 %v1472_v17  ;;  %1269 = vmatprep.subr.bf16.mxu0 %v1547_v41  ;;  %v1580_v17 = vld [vmem:[%s2207_s3 + $0x284] ss:$8 sps:$4 sm:$0xff]   ;;  %v715_v41 = vsub.s32 1, %v710_v38 }
  0x57   :  { %1171 = vmatpush1.bf16.msra.mxu1 %v1474_v18  ;;  %1271 = vmatpush1.bf16.msra.mxu0 %v1549_v43  ;;  %v1582_v18 = vld [vmem:[%s2207_s3 + $0x280] ss:$8 sps:$4 sm:$0xff]  }
  0x58   :  { %1173 = vmatprep.subr.bf16.mxu1 %v1475_v19  ;;  %1273 = vmatprep.subr.bf16.mxu0 %v1550_v45  ;;  %v1583_v19 = vld [vmem:[%s2207_s3 + $0x294] ss:$8 sps:$4 sm:$0xff]  }
  0x5b   :  { %1175 = vmatpush1.bf16.msra.mxu1 %v1477_v20  ;;  %1275 = vmatpush1.bf16.msra.mxu0 %v1552_v47  ;;  %v1585_v20 = vld [vmem:[%s2207_s3 + $0x290] ss:$8 sps:$4 sm:$0xff]   ;;  %v1611_v47 = vmov 1983009808  }
  0x5c   :  { %1177 = vmatprep.subr.bf16.mxu1 %v1481_v21  ;;  %1277 = vmatprep.subr.bf16.mxu0 %v1553_v49  ;;  %v1586_v21 = vld [vmem:[%s2207_s3 + $0x2a4] ss:$8 sps:$4 sm:$0xff]  }
  0x5f   :  { %1179 = vmatpush1.bf16.msra.mxu1 %v1483_v22  ;;  %1279 = vmatpush1.bf16.msra.mxu0 %v1555_v51  ;;  %v1588_v22 = vld [vmem:[%s2207_s3 + $0x2a0] ss:$8 sps:$4 sm:$0xff]  }
  0x60   :  { %1181 = vmatprep.subr.bf16.mxu1 %v1487_v23  ;;  %1281 = vmatprep.subr.bf16.mxu0 %v1556_v53  ;;  %v1589_v23 = vld [vmem:[%s2207_s3 + $0x2b4] ss:$8 sps:$4 sm:$0xff]  }
  0x63   :  { %1183 = vmatpush1.bf16.msra.mxu1 %v1489_v24  ;;  %v1591_v24 = vld [vmem:[%s2207_s3 + $0x2b0] ss:$8 sps:$4 sm:$0xff]  }
  0x64   :  { %1185 = vmatprep.subr.bf16.mxu1 %v1493_v25  ;;  %v1592_v25 = vld [vmem:[%s2207_s3 + $0x2c4] ss:$8 sps:$4 sm:$0xff]  }
  0x67   :  { %1187 = vmatpush1.bf16.msra.mxu1 %v1495_v26  ;;  %v1594_v26 = vld [vmem:[%s2207_s3 + $0x2c0] ss:$8 sps:$4 sm:$0xff]  }
  0x68   :  { %1189 = vmatprep.subr.bf16.mxu1 %v1499_v27  ;;  %v1595_v27 = vld [vmem:[%s2207_s3 + $0x2d4] ss:$8 sps:$4 sm:$0xff]  }
  0x6b   :  { %1191 = vmatpush1.bf16.msra.mxu1 %v1501_v28  ;;  %v1597_v28 = vld [vmem:[%s2207_s3 + $0x2d0] ss:$8 sps:$4 sm:$0xff]  }
  0x6c   :  { %1193 = vmatprep.subr.bf16.mxu1 %v1505_v29  ;;  %v1598_v29 = vld [vmem:[%s2207_s3 + $0x2e4] ss:$8 sps:$4 sm:$0xff]  }
  0x6f   :  { %1195 = vmatpush1.bf16.msra.mxu1 %v1507_v30  ;;  %v1600_v30 = vld [vmem:[%s2207_s3 + $0x2e0] ss:$8 sps:$4 sm:$0xff]  }
  0x70   :  { %1197 = vmatprep.subr.bf16.mxu1 %v1511_v32  ;;  %v1603_v32 = vld [vmem:[%s2207_s3 + $0x2f0] ss:$8 sps:$4 sm:$0xff]  }
  0x73   :  { %1199 = vmatpush1.bf16.msra.mxu1 %v1513_v34 }
  0x74   :  { %1201 = vmatprep.subr.bf16.mxu1 %v1517_v36 }
  0x77   :  { %1203 = vmatpush1.bf16.msra.mxu1 %v1519_v40  ;;  %v702_v40 = vld [vmem:[%s2209_s4] sm:$0x3] }
  0x78   :  { %1205 = vmatprep.subr.bf16.mxu1 %v1523_v42  ;;  %v712_v42 = vrot.slane %v702_v40, %v711_v39  ;;  %v716_v43 = vrot.slane %v702_v40, %v715_v41 }
  0x7b   :  { %1207 = vmatpush1.bf16.msra.mxu1 %v1525_v44 }
  0x7c   :  { %1209 = vmatprep.subr.bf16.mxu1 %v1529_v46 }
  0x7f   :  { %1211 = vmatpush1.bf16.msra.mxu1 %v1531_v48  ;;  %v1013_v48 = vunpack.c.l.s4 %v1611_v47 }
  0x80   :  { %1213 = vmatprep.subr.bf16.mxu1 %v1535_v50 }
  0x83   :  { %1215 = vmatpush1.bf16.msra.mxu1 %v1537_v52  ;;  %v1014_v52 = vunpack.c.0.s8 %v1013_v48 }
  0x84   :  { %1345 = vmatprep.subr.bf16.mxu1 %v1604_v56 }
  0xb3   :  { %v706_v44 = vpop.permute.xlu0 %705 }
  0xb4   :  { %v719_v45 = vmul.f32 %v712_v42, %v706_v44  ;;  %v720_v46 = vmul.f32 %v716_v43, %v706_v44 }
  0xed   :  { %v190_v57 = vpop.f32.mrb[0].mxu1 }
  0xee   :  { %v192_v60 = vpop.f32.mrb[1].mxu1 }
  0xef   :  { %789 = vmatprep.mubr.f32.mxu1 %v192_v60 }
  0xf0   :  { %790 = vmatmul.mubr.f32.vlgmr.msra.gmra.mrb[6].mxu1 %v190_v57 }
  0xf1   :  { %1347 = vmatpush1.bf16.msra.mxu1 %v1606_v58  ;;  %1002 = vmatprep.mubr.f32.mxu1 %v1607_v3  ;;  %v1561_v3 = vld [vmem:[%s2207_s3 + $0x210] ss:$8 sps:$4 sm:$0xff]   ;;  %v1017_v58 = vsub.s32 %v1014_v52, %v710_v38 }
  0xf4   :  { %v2103_v61 = vpop.f32.mrb[0].mxu0 }
  0xf5   :  { %v334_v62 = vpop.f32.mrb[1].mxu0 }
 0x103   :  { %v261_v63 = vpop.f32.mrb[2].mxu1 }
 0x104   :  { %v263_v1 = vpop.f32.mrb[3].mxu1 }
 0x105   :  { %860 = vmatprep.mubr.f32.mxu0 %v263_v1 }
 0x106   :  { %861 = vmatmul.mubr.f32.vlgmr.msra.gmra.mrb[2].mxu0 %v261_v63 }
 0x107   :  { %1283 = vmatpush1.bf16.msra.mxu0 %v1558_v0  ;;  %931 = vmatprep.mubr.f32.mxu0 %v334_v62 }
 0x108   :  { %1285 = vmatprep.subr.bf16.mxu0 %v1559_v2 }
 0x10b   :  { %1287 = vmatpush1.bf16.msra.mxu0 %v1561_v3 }
 0x10c   :  { %1289 = vmatprep.subr.bf16.mxu0 %v1562_v4 }
 0x10f   :  { %1291 = vmatpush1.bf16.msra.mxu0 %v1564_v5 }
 0x110   :  { %1293 = vmatprep.subr.bf16.mxu0 %v1565_v6 }
 0x113   :  { %1295 = vmatpush1.bf16.msra.mxu0 %v1567_v7 }
 0x114   :  { %1297 = vmatprep.subr.bf16.mxu0 %v1568_v8 }
 0x117   :  { %1299 = vmatpush1.bf16.msra.mxu0 %v1570_v9 }
 0x118   :  { %1301 = vmatprep.subr.bf16.mxu0 %v1571_v10 }
 0x119   :  { %v403_v13 = vpop.f32.mrb[4].mxu1 }
 0x11a   :  { %v1076_v14 = vpop.f32.mrb[5].mxu1  ;;  %1039 = vmatmul.mubr.msk.f32.vlgmr.msra.gmra.mrb[8].mxu1 %vm721_vm3, %v403_v13 }
 0x11b   :  { %1303 = vmatpush1.bf16.msra.mxu0 %v1573_v11 }
 0x11c   :  { %1305 = vmatprep.subr.bf16.mxu0 %v1574_v12 }
 0x11f   :  { %1307 = vmatpush1.bf16.msra.mxu0 %v1576_v59 }
 0x120   :  { %1309 = vmatprep.subr.bf16.mxu0 %v1577_v15 }
 0x123   :  { %1311 = vmatpush1.bf16.msra.mxu0 %v1579_v16 }
 0x124   :  { %1313 = vmatprep.subr.bf16.mxu0 %v1580_v17 }
 0x127   :  { %1315 = vmatpush1.bf16.msra.mxu0 %v1582_v18 }
 0x128   :  { %1317 = vmatprep.subr.bf16.mxu0 %v1583_v19 }
 0x12b   :  { %1319 = vmatpush1.bf16.msra.mxu0 %v1585_v20 }
 0x12c   :  { %1321 = vmatprep.subr.bf16.mxu0 %v1586_v21 }
 0x12f   :  { %1323 = vmatpush1.bf16.msra.mxu0 %v1588_v22 }
 0x130   :  { %1325 = vmatprep.subr.bf16.mxu0 %v1589_v23 }
 0x133   :  { %1327 = vmatpush1.bf16.msra.mxu0 %v1591_v24 }
 0x134   :  { %1329 = vmatprep.subr.bf16.mxu0 %v1592_v25 }
 0x137   :  { %1331 = vmatpush1.bf16.msra.mxu0 %v1594_v26 }
 0x138   :  { %1333 = vmatprep.subr.bf16.mxu0 %v1595_v27 }
 0x13b   :  { %1335 = vmatpush1.bf16.msra.mxu0 %v1597_v28 }
 0x13c   :  { %1337 = vmatprep.subr.bf16.mxu0 %v1598_v29 }
 0x13f   :  { %1339 = vmatpush1.bf16.msra.mxu0 %v1600_v30 }
 0x140   :  { %1341 = vmatprep.subr.bf16.mxu0 %v1601_v31 }
 0x143   :  { %1343 = vmatpush1.bf16.msra.mxu0 %v1603_v32 }
 0x146   :  { %932 = vmatmul.mubr.f32.vlgmr.msra.gmra.mrb[2].mxu0 %v2103_v61 }
 0x1c3   :  { %v791_v33 = vpop.f32.mrb[6].mxu1 }
 0x1c4   :  { %v793_v34 = vpop.f32.mrb[7].mxu1  ;;  %v792_v49 = vadd.f32 %v791_v33, %v719_v45 }
 0x1c5   :  { %v794_v50 = vadd.f32 %v793_v34, %v720_v46 }
 0x1ed   :  { %v1004_v35 = vpop.f32.mrb[8].mxu1 }
 0x1ee   :  { %v1006_v36 = vpop.f32.mrb[9].mxu1 }
 0x219   :  { %v933_v51 = vpop.f32.mrb[2].mxu0 }
 0x21a   :  { %v1349_v53 = vadd.f32 %v933_v51, %v792_v49  ;;  %v935_v54 = vpop.f32.mrb[3].mxu0 }
 0x21b   :  { %v1352_v55 = vadd.f32 %v935_v54, %v794_v50 }
 0x21c   :  { %v1350_v56 = vadd.f32 %v1349_v53, %v1004_v35 }
 0x21d   :  { %v1353_v57 = vadd.f32 %v1352_v55, %v1006_v36 }
 0x21f   :  { %v1011_v60 = vcombine.low %v1350_v56, %v1353_v57 }
 0x221   :  { %v1018_v61 = vrot.slane %v1011_v60, %v1017_v58 }
 0x223   :  { %1023 = vst.msk [vmem:[%s2210_s5] sm:$0xf] %vm1022_vm6, %v1018_v61 }

</bundles_post_ra>
